<compile_context>
chip_gen: v7x
topology: tpu7x:2x2x1
jax: 0.10.0
libtpu: 0.0.40
codegen_flags: <defaults>
</compile_context>

<pallas_src>
import functools

import jax
import jax.numpy as jnp
from jax.experimental import pallas as pl
from jax.experimental.pallas import tpu as pltpu

HIDDEN = 256


def _round_up(x, m):
    return (x + m - 1) // m * m


def sac_actor_kernel(x_ref, w1_ref, b1_ref, w2_ref, b2_ref, wh_ref, bh_ref,
                     aff_ref, out_ref, *, compute_dtype):
    # trunk: Linear(obs, 256) -> ReLU -> Linear(256, 256) -> ReLU
    # (ReLU stays on the f32 accumulator; cast to bf16 only for the next MXU pass.)
    x = x_ref[...].astype(compute_dtype)
    h1 = jnp.dot(x, w1_ref[...], preferred_element_type=jnp.float32) + b1_ref[...]
    h1 = jnp.maximum(h1, 0.0).astype(compute_dtype)
    h2 = jnp.dot(h1, w2_ref[...], preferred_element_type=jnp.float32) + b2_ref[...]
    h2 = jnp.maximum(h2, 0.0).astype(compute_dtype)

    # fused heads: lanes [0, A) = mean, [A, 2A) = raw logstd, rest = zero pad.
    head = jnp.dot(h2, wh_ref[...], preferred_element_type=jnp.float32) + bh_ref[...]

    # Per-lane affine constants (precomputed in prepare_params):
    #   mean lanes:   pass=1, tanh_scale=0, off=0          -> head
    #   logstd lanes: pass=0, tanh_scale=s, off=min+s      -> min + s*(tanh(head)+1)
    #   pad lanes:    all zero                              -> 0
    pass_s = aff_ref[0:1, :]
    tanh_s = aff_ref[1:2, :]
    off = aff_ref[2:3, :]
    out = pass_s * head + tanh_s * jnp.tanh(head) + off   # tanh -> EUP slot (free-ish)
    out_ref[...] = out.astype(out_ref.dtype)


def prepare_params(params, *, logstd_min=-5.0, logstd_max=2.0,
                   compute_dtype=jnp.bfloat16):
    """One-time preprocessing: fuse heads, cast weights, build lane constants.

    Call once after each parameter update, NOT per forward step.
    """
    w1, b1, w2, b2, wm, bm, wl, bl = params
    obs_dim = w1.shape[0]
    A = wm.shape[1]
    head_pad = max(128, _round_up(2 * A, 128))  # lane-dense fused head width

    # Fuse mean/logstd heads into one [HIDDEN, head_pad] weight (zero padded).
    wh = jnp.zeros((HIDDEN, head_pad), jnp.float32)
    wh = wh.at[:, :A].set(wm).at[:, A:2 * A].set(wl)
    bh = jnp.zeros((1, head_pad), jnp.float32)
    bh = bh.at[:, :A].set(bm[0]).at[:, A:2 * A].set(bl[0])

    # Per-lane affine constants for the head post-processing.
    scale = 0.5 * (float(logstd_max) - float(logstd_min))
    offset = float(logstd_min) + scale
    lane = jnp.arange(head_pad)
    is_mean = lane < A
    is_logstd = (lane >= A) & (lane < 2 * A)
    affine = jnp.stack([
        jnp.where(is_mean, 1.0, 0.0),
        jnp.where(is_logstd, scale, 0.0),
        jnp.where(is_logstd, offset, 0.0),
    ]).astype(jnp.float32)                                  # [3, head_pad]

    return {
        "w1": w1.astype(compute_dtype), "b1": b1,
        "w2": w2.astype(compute_dtype), "b2": b2,
        "wh": wh.astype(compute_dtype), "bh": bh,
        "affine": affine,
        "obs_dim": int(obs_dim),
        "action_dim": int(A),
        "head_pad": int(head_pad),
        "compute_dtype": compute_dtype,
    }


def sac_actor_forward(x, prepared, *, tile_b=256, out_dtype=jnp.float32):
    """x: [B, obs_dim] float32 -> (mean [B, A], logstd [B, A]) float32."""
    B, obs_dim = x.shape
    assert obs_dim == prepared["obs_dim"]
    A = prepared["action_dim"]
    head_pad = prepared["head_pad"]
    compute_dtype = prepared["compute_dtype"]
    w1, b1 = prepared["w1"], prepared["b1"]
    w2, b2 = prepared["w2"], prepared["b2"]
    wh, bh = prepared["wh"], prepared["bh"]
    aff = prepared["affine"]

    # Batch tiling: divide the padded batch as evenly as possible into >=8-row
    # tiles; force >=2 grid steps when bp > 8 so v7x's two TCs both get work.
    bp = _round_up(max(B, 8), 8)
    n_tiles = pl.cdiv(bp, max(int(tile_b), 8))
    if bp > 8:
        n_tiles = max(n_tiles, 2)
    tb = _round_up(pl.cdiv(bp, n_tiles), 8)
    bp = n_tiles * tb
    xp = x if bp == B else jnp.pad(x, ((0, bp - B), (0, 0)))

    grid = (n_tiles,)

    def const_spec(arr):
        return pl.BlockSpec(arr.shape, lambda i: (0,) * arr.ndim)

    kernel = functools.partial(sac_actor_kernel, compute_dtype=compute_dtype)

    out_itemsize = jnp.dtype(out_dtype).itemsize
    flops = 2 * bp * (obs_dim * HIDDEN + HIDDEN * HIDDEN + HIDDEN * head_pad)
    bytes_accessed = (
        xp.size * 4
        + w1.size * 2 + w2.size * 2 + wh.size * 2
        + b1.size * 4 + b2.size * 4 + bh.size * 4 + aff.size * 4
        + bp * head_pad * out_itemsize
    )

    out = pl.pallas_call(
        kernel,
        out_shape=jax.ShapeDtypeStruct((bp, head_pad), out_dtype),
        grid=grid,
        in_specs=[
            pl.BlockSpec((tb, obs_dim), lambda i: (i, 0)),   # activations: tiled
            const_spec(w1), const_spec(b1),                  # weights: VMEM-resident
            const_spec(w2), const_spec(b2),
            const_spec(wh), const_spec(bh),
            const_spec(aff),
        ],
        out_specs=pl.BlockSpec((tb, head_pad), lambda i: (i, 0)),
        compiler_params=pltpu.CompilerParams(
            dimension_semantics=("parallel",),               # 2x on v7x megacore
        ),
        cost_estimate=pl.CostEstimate(
            flops=flops,
            transcendentals=bp * head_pad,
            bytes_accessed=bytes_accessed,
        ),
    )(xp, w1, b1, w2, b2, wh, bh, aff)

    mean = out[:B, :A].astype(jnp.float32)
    logstd = out[:B, A:2 * A].astype(jnp.float32)
    return mean, logstd


def init_params(key, obs_dim, action_dim, hidden=HIDDEN):
    """Deterministic init mimicking nn.Linear (uniform +-1/sqrt(fan_in))."""
    def linear(k, fan_in, fan_out):
        kw, kb = jax.random.split(k)
        bound = 1.0 / jnp.sqrt(jnp.float32(fan_in))
        w = jax.random.uniform(kw, (fan_in, fan_out), jnp.float32, -bound, bound)
        b = jax.random.uniform(kb, (1, fan_out), jnp.float32, -bound, bound)
        return w, b

    k1, k2, k3, k4 = jax.random.split(key, 4)
    w1, b1 = linear(k1, obs_dim, hidden)
    w2, b2 = linear(k2, hidden, hidden)
    wm, bm = linear(k3, hidden, action_dim)
    wl, bl = linear(k4, hidden, action_dim)
    return (w1, b1, w2, b2, wm, bm, wl, bl)


def reference_forward(x, params, logstd_min=-5.0, logstd_max=2.0,
                      compute_dtype=jnp.float32):
    """Pure-JAX reference; compute_dtype mirrors the kernel's matmul cast."""
    w1, b1, w2, b2, wm, bm, wl, bl = params
    c = lambda a: a.astype(compute_dtype)
    h1 = jnp.maximum(
        jnp.dot(c(x), c(w1), preferred_element_type=jnp.float32) + b1, 0.0)
    h2 = jnp.maximum(
        jnp.dot(c(h1), c(w2), preferred_element_type=jnp.float32) + b2, 0.0)
    mean = jnp.dot(c(h2), c(wm), preferred_element_type=jnp.float32) + bm
    t = jnp.tanh(jnp.dot(c(h2), c(wl), preferred_element_type=jnp.float32) + bl)
    logstd = logstd_min + 0.5 * (logstd_max - logstd_min) * (t + 1.0)
    return mean, logstd


if __name__ == "__main__":
    batch = 2
    obs_dim = 16
    action_dim = 8

    key = jax.random.PRNGKey(0)
    kx, kp = jax.random.split(key)
    x = jax.random.normal(kx, (batch, obs_dim), jnp.float32)
    params = init_params(kp, obs_dim, action_dim)

    # One-time preprocessing (head fusion + bf16 casts) -- off the hot path.
    prepared = prepare_params(params)

    mean, logstd = sac_actor_forward(x, prepared)
    jax.block_until_ready((mean, logstd))

    assert mean.shape == (batch, action_dim)
    assert logstd.shape == (batch, action_dim)

    # Tight check vs. a reference that uses the same bf16 matmul operands.
    ref_mean_bf, ref_logstd_bf = reference_forward(
        x, params, compute_dtype=jnp.bfloat16)
    assert jnp.allclose(mean, ref_mean_bf, atol=2e-3, rtol=2e-3)
    assert jnp.allclose(logstd, ref_logstd_bf, atol=2e-3, rtol=2e-3)

    # Coarse semantic check vs. the full-f32 reference.
    ref_mean, ref_logstd = reference_forward(x, params)
    assert jnp.allclose(mean, ref_mean, atol=5e-2, rtol=5e-2)
    assert jnp.allclose(logstd, ref_logstd, atol=5e-2, rtol=5e-2)

    # Also exercise a larger, non-tile-aligned batch (multi-step grid path).
    xb = jax.random.normal(kx, (300, obs_dim), jnp.float32)
    mb, lb = sac_actor_forward(xb, prepared)
    jax.block_until_ready((mb, lb))
    rm, rl = reference_forward(xb, params, compute_dtype=jnp.bfloat16)
    assert jnp.allclose(mb, rm, atol=2e-3, rtol=2e-3)
    assert jnp.allclose(lb, rl, atol=2e-3, rtol=2e-3)

    print("KERNEL_OK")
</pallas_src>

<mosaic_0001>
module attributes {stable_mosaic.version = 11 : i64} {
  func.func @sac_actor_kernel(%arg0: i32, %arg1: memref<8x16xf32, #tpu.memory_space<vmem>>, %arg2: memref<16x256xbf16, #tpu.memory_space<vmem>>, %arg3: memref<1x256xf32, #tpu.memory_space<vmem>>, %arg4: memref<256x256xbf16, #tpu.memory_space<vmem>>, %arg5: memref<1x256xf32, #tpu.memory_space<vmem>>, %arg6: memref<256x128xbf16, #tpu.memory_space<vmem>>, %arg7: memref<1x128xf32, #tpu.memory_space<vmem>>, %arg8: memref<3x128xf32, #tpu.memory_space<vmem>>, %arg9: memref<8x128xf32, #tpu.memory_space<vmem>>) attributes {dimension_semantics = [#tpu.dimension_semantics<parallel>], iteration_bounds = array<i64: 1>, scalar_prefetch = 0 : i64, scratch_operands = 0 : i64, tpu.core_type = #tpu.core_type<tc>, window_params = [{transform_indices = @transform_0, window_bounds = array<i64: 8, 16>}, {pipeline_mode = #tpu.pipeline_mode<synchronous>, transform_indices = @transform_1, window_bounds = array<i64: 16, 256>}, {pipeline_mode = #tpu.pipeline_mode<synchronous>, transform_indices = @transform_2, window_bounds = array<i64: 1, 256>}, {pipeline_mode = #tpu.pipeline_mode<synchronous>, transform_indices = @transform_3, window_bounds = array<i64: 256, 256>}, {pipeline_mode = #tpu.pipeline_mode<synchronous>, transform_indices = @transform_4, window_bounds = array<i64: 1, 256>}, {pipeline_mode = #tpu.pipeline_mode<synchronous>, transform_indices = @transform_5, window_bounds = array<i64: 256, 128>}, {pipeline_mode = #tpu.pipeline_mode<synchronous>, transform_indices = @transform_6, window_bounds = array<i64: 1, 128>}, {pipeline_mode = #tpu.pipeline_mode<synchronous>, transform_indices = @transform_7, window_bounds = array<i64: 3, 128>}, {transform_indices = @transform_8, window_bounds = array<i64: 8, 128>}]} {
    %c0 = arith.constant 0 : index
    %c0_0 = arith.constant 0 : index
    %0 = vector.load %arg1[%c0, %c0_0] : memref<8x16xf32, #tpu.memory_space<vmem>>, vector<8x16xf32>
    %1 = arith.truncf %0 : vector<8x16xf32> to vector<8x16xbf16>
    %c0_1 = arith.constant 0 : index
    %c0_2 = arith.constant 0 : index
    %2 = vector.load %arg2[%c0_1, %c0_2] : memref<16x256xbf16, #tpu.memory_space<vmem>>, vector<16x256xbf16>
    %cst = arith.constant dense<0.000000e+00> : vector<8x256xf32>
    %3 = tpu.matmul %1, %2, %cst {dimension_numbers = #tpu.dot_dimension_numbers<[1], [0], [0], [1], [0, 0, 1, 1], [], []>} : vector<8x16xbf16>, vector<16x256xbf16>, vector<8x256xf32> -> vector<8x256xf32>
    %c0_3 = arith.constant 0 : index
    %c0_4 = arith.constant 0 : index
    %4 = vector.load %arg3[%c0_3, %c0_4] : memref<1x256xf32, #tpu.memory_space<vmem>>, vector<1x256xf32>
    %5 = vector.broadcast %4 : vector<1x256xf32> to vector<8x256xf32>
    %6 = arith.addf %3, %5 : vector<8x256xf32>
    %cst_5 = arith.constant 0.000000e+00 : f32
    %7 = vector.broadcast %cst_5 : f32 to vector<8x256xf32>
    %8 = arith.maximumf %6, %7 : vector<8x256xf32>
    %9 = arith.truncf %8 : vector<8x256xf32> to vector<8x256xbf16>
    %c0_6 = arith.constant 0 : index
    %c0_7 = arith.constant 0 : index
    %10 = vector.load %arg4[%c0_6, %c0_7] : memref<256x256xbf16, #tpu.memory_space<vmem>>, vector<256x256xbf16>
    %cst_8 = arith.constant dense<0.000000e+00> : vector<8x256xf32>
    %11 = tpu.matmul %9, %10, %cst_8 {dimension_numbers = #tpu.dot_dimension_numbers<[1], [0], [0], [1], [0, 0, 1, 1], [], []>} : vector<8x256xbf16>, vector<256x256xbf16>, vector<8x256xf32> -> vector<8x256xf32>
    %c0_9 = arith.constant 0 : index
    %c0_10 = arith.constant 0 : index
    %12 = vector.load %arg5[%c0_9, %c0_10] : memref<1x256xf32, #tpu.memory_space<vmem>>, vector<1x256xf32>
    %13 = vector.broadcast %12 : vector<1x256xf32> to vector<8x256xf32>
    %14 = arith.addf %11, %13 : vector<8x256xf32>
    %cst_11 = arith.constant 0.000000e+00 : f32
    %15 = vector.broadcast %cst_11 : f32 to vector<8x256xf32>
    %16 = arith.maximumf %14, %15 : vector<8x256xf32>
    %17 = arith.truncf %16 : vector<8x256xf32> to vector<8x256xbf16>
    %c0_12 = arith.constant 0 : index
    %c0_13 = arith.constant 0 : index
    %18 = vector.load %arg6[%c0_12, %c0_13] : memref<256x128xbf16, #tpu.memory_space<vmem>>, vector<256x128xbf16>
    %cst_14 = arith.constant dense<0.000000e+00> : vector<8x128xf32>
    %19 = tpu.matmul %17, %18, %cst_14 {dimension_numbers = #tpu.dot_dimension_numbers<[1], [0], [0], [1], [0, 0, 1, 1], [], []>} : vector<8x256xbf16>, vector<256x128xbf16>, vector<8x128xf32> -> vector<8x128xf32>
    %c0_15 = arith.constant 0 : index
    %c0_16 = arith.constant 0 : index
    %20 = vector.load %arg7[%c0_15, %c0_16] : memref<1x128xf32, #tpu.memory_space<vmem>>, vector<1x128xf32>
    %21 = vector.broadcast %20 : vector<1x128xf32> to vector<8x128xf32>
    %22 = arith.addf %19, %21 : vector<8x128xf32>
    %c0_17 = arith.constant 0 : index
    %c0_18 = arith.constant 0 : index
    %23 = vector.load %arg8[%c0_17, %c0_18] : memref<3x128xf32, #tpu.memory_space<vmem>>, vector<1x128xf32>
    %c1 = arith.constant 1 : index
    %c0_19 = arith.constant 0 : index
    %24 = vector.load %arg8[%c1, %c0_19] : memref<3x128xf32, #tpu.memory_space<vmem>>, vector<1x128xf32>
    %c2 = arith.constant 2 : index
    %c0_20 = arith.constant 0 : index
    %25 = vector.load %arg8[%c2, %c0_20] : memref<3x128xf32, #tpu.memory_space<vmem>>, vector<1x128xf32>
    %26 = vector.broadcast %23 : vector<1x128xf32> to vector<8x128xf32>
    %27 = arith.mulf %26, %22 : vector<8x128xf32>
    %28 = math.tanh %22 : vector<8x128xf32>
    %29 = vector.broadcast %24 : vector<1x128xf32> to vector<8x128xf32>
    %30 = arith.mulf %29, %28 : vector<8x128xf32>
    %31 = arith.addf %27, %30 : vector<8x128xf32>
    %32 = vector.broadcast %25 : vector<1x128xf32> to vector<8x128xf32>
    %33 = arith.addf %31, %32 : vector<8x128xf32>
    %c0_21 = arith.constant 0 : index
    %c0_22 = arith.constant 0 : index
    %34 = vector.load %arg9[%c0_21, %c0_22] : memref<8x128xf32, #tpu.memory_space<vmem>>, vector<8x128xf32>
    tpu.vector_store %arg9[%c0_21, %c0_22], %33 {strides = array<i32>} : memref<8x128xf32, #tpu.memory_space<vmem>>, vector<8x128xf32>,
    return
  }
  func.func @transform_0(%arg0: i32) -> (i32, i32) {
    %c0_i32 = arith.constant 0 : i32
    %c0_i32_0 = arith.constant 0 : i32
    return %arg0, %c0_i32 : i32, i32
  }
  func.func @transform_1(%arg0: i32) -> (i32, i32) {
    %c0_i32 = arith.constant 0 : i32
    %c0_i32_0 = arith.constant 0 : i32
    %c0_i32_1 = arith.constant 0 : i32
    return %c0_i32, %c0_i32_0 : i32, i32
  }
  func.func @transform_2(%arg0: i32) -> (i32, i32) {
    %c0_i32 = arith.constant 0 : i32
    %c0_i32_0 = arith.constant 0 : i32
    %c0_i32_1 = arith.constant 0 : i32
    return %c0_i32, %c0_i32_0 : i32, i32
  }
  func.func @transform_3(%arg0: i32) -> (i32, i32) {
    %c0_i32 = arith.constant 0 : i32
    %c0_i32_0 = arith.constant 0 : i32
    %c0_i32_1 = arith.constant 0 : i32
    return %c0_i32, %c0_i32_0 : i32, i32
  }
  func.func @transform_4(%arg0: i32) -> (i32, i32) {
    %c0_i32 = arith.constant 0 : i32
    %c0_i32_0 = arith.constant 0 : i32
    %c0_i32_1 = arith.constant 0 : i32
    return %c0_i32, %c0_i32_0 : i32, i32
  }
  func.func @transform_5(%arg0: i32) -> (i32, i32) {
    %c0_i32 = arith.constant 0 : i32
    %c0_i32_0 = arith.constant 0 : i32
    %c0_i32_1 = arith.constant 0 : i32
    return %c0_i32, %c0_i32_0 : i32, i32
  }
  func.func @transform_6(%arg0: i32) -> (i32, i32) {
    %c0_i32 = arith.constant 0 : i32
    %c0_i32_0 = arith.constant 0 : i32
    %c0_i32_1 = arith.constant 0 : i32
    return %c0_i32, %c0_i32_0 : i32, i32
  }
  func.func @transform_7(%arg0: i32) -> (i32, i32) {
    %c0_i32 = arith.constant 0 : i32
    %c0_i32_0 = arith.constant 0 : i32
    %c0_i32_1 = arith.constant 0 : i32
    return %c0_i32, %c0_i32_0 : i32, i32
  }
  func.func @transform_8(%arg0: i32) -> (i32, i32) {
    %c0_i32 = arith.constant 0 : i32
    %c0_i32_0 = arith.constant 0 : i32
    return %arg0, %c0_i32 : i32, i32
  }
}

</mosaic_0001>

<bundles_post_ra>
// kernel: tpu_custom_call.1
= control target key start
LH: loop header
LB: loop body
LE: loop exit
PB: predicated region body
PF: predicated region fallthrough
CT: control target
= control target key end

     0   :  { %13 = vsyncpa [#allocation3], 0  ;;  %s1034_s0 = inlined_call_operand.hbm [shape: f32[8,16], index: 0, kind: input, shape index: {}]   ;;  %s1035_s1 = inlined_call_operand.hbm [shape: bf16[16,256], index: 1, kind: input, shape index: {}]   ;;  %s1036_s2 = inlined_call_operand.vmem [shape: f32[1,256], index: 2, kind: input, shape index: {}]   ;;  %s1037_s3 = inlined_call_operand.hbm [shape: bf16[256,256], index: 3, kind: input, shape index: {}]   ;;  %s1038_s4 = inlined_call_operand.vmem [shape: f32[1,256], index: 4, kind: input, shape index: {}]   ;;  %s1039_s5 = inlined_call_operand.hbm [shape: bf16[256,128], index: 5, kind: input, shape index: {}]   ;;  %s1040_s6 = inlined_call_operand.vmem [shape: f32[1,128], index: 6, kind: input, shape index: {}]   ;;  %s1041_s7 = inlined_call_operand.vmem [shape: f32[3,128], index: 7, kind: input, shape index: {}]   ;;  %s1042_s8 = inlined_call_operand.hbm [shape: f32[8,128], index: 8, kind: output, shape index: {}]  }
   0x1   :  { %14 = vsyncpa [#allocation6], 0 }
   0x2   :  { %15 = vsyncpa [#allocation9], 0 }
   0x3   :  { %16 = vsyncpa [#allocation4], 0  ;;  %s895_s27 = smov [#allocation5]   ;;  %s777_s9 = scalar_lea.hbm %s1035_s1, 256 }
   0x4   :  { %s32_s28 = sshll.u32 %s895_s27, 4  ;;  %p778_p0 = scmp.ne.s32.totalorder %s1035_s1, %s777_s9  ;;  %s33_s28 = int_to_ptr.vmem [resolvable:$true] %s32_s28 }
   0x5   :  { %p781_p1 = scmp.lt.u32.totalorder %s777_s9, %s1035_s1 }
   0x7   :  { %p783_p2 = pnand %p781_p1, %p778_p0 }
   0x9   :  { %786 = shalt.err (!%p783_p2)
}
   0xa   :  { %s787_s14 = scalar_lea.vmem %s33_s28, 256  ;;  %p792_p4 = scmp.lt.s32.totalorder %s33_s28, %s33_s28 }
   0xb   :  { %p788_p3 = scmp.ne.s32.totalorder %s33_s28, %s787_s14  ;;  %p793_p5 = scmp.lt.s32.totalorder %s787_s14, %s787_s14 }
   0xd   :  { %p794_p6 = por %p793_p5, %p792_p4 }
   0xf   :  { %p795_p7 = pnand %p794_p6, %p788_p3 }
  0x11   :  { %798 = shalt.err (!%p795_p7)
}
  0x12   :  { %s896_s15 = smov 128   ;;  %s897_s16 = smov 8  }
  0x13   :  { %38 = dma.hbm_to_vmem [thread:$0]  %s1035_s1, 256, %s33_s28, [#allocation6], %s896_s15, %s896_s15, %s897_s16  }
  0x14   :  { %s898_s19 = smov [#allocation2]   ;;  %s899_s21 = smov [#allocation7]  }
  0x15   :  { %s23_s20 = sshll.u32 %s898_s19, 4  ;;  %s46_s22 = sshll.u32 %s899_s21, 4  ;;  %s24_s20 = int_to_ptr.vmem [resolvable:$true] %s23_s20  ;;  %s47_s22 = int_to_ptr.vmem [resolvable:$true] %s46_s22 }
  0x16   :  { %s799_s25 = scalar_lea.hbm %s1034_s0, 128 }
  0x17   :  { %p800_p8 = scmp.ne.s32.totalorder %s1034_s0, %s799_s25  ;;  %p803_p9 = scmp.lt.u32.totalorder %s799_s25, %s1034_s0 }
  0x19   :  { %p805_p10 = pnand %p803_p9, %p800_p8 }
  0x1b   :  { %808 = shalt.err (!%p805_p10)
}
  0x1c   :  { %s809_s1 = scalar_lea.vmem %s24_s20, 128  ;;  %p814_p12 = scmp.lt.s32.totalorder %s24_s20, %s24_s20 }
  0x1d   :  { %p810_p11 = scmp.ne.s32.totalorder %s24_s20, %s809_s1  ;;  %p815_p13 = scmp.lt.s32.totalorder %s809_s1, %s809_s1 }
  0x1f   :  { %p816_p0 = por %p815_p13, %p814_p12 }
  0x21   :  { %p817_p1 = pnand %p816_p0, %p810_p11 }
  0x23   :  { %820 = shalt.err (!%p817_p1)
}
  0x24   :  { %26 = dma.hbm_to_vmem [thread:$0]  %s1034_s0, 128, %s24_s20, [#allocation3]  }
  0x25   :  { %s821_s12 = scalar_lea.hbm %s1037_s3, 4096 }
  0x26   :  { %p822_p2 = scmp.ne.s32.totalorder %s1037_s3, %s821_s12  ;;  %p825_p3 = scmp.lt.u32.totalorder %s821_s12, %s1037_s3 }
  0x28   :  { %p827_p4 = pnand %p825_p3, %p822_p2 }
  0x2a   :  { %830 = shalt.err (!%p827_p4)
}
  0x2b   :  { %s831_s19 = scalar_lea.vmem %s47_s22, 4096  ;;  %p836_p6 = scmp.lt.s32.totalorder %s47_s22, %s47_s22 }
  0x2c   :  { %p832_p5 = scmp.ne.s32.totalorder %s47_s22, %s831_s19  ;;  %p837_p7 = scmp.lt.s32.totalorder %s831_s19, %s831_s19 }
  0x2e   :  { %p838_p8 = por %p837_p7, %p836_p6 }
  0x30   :  { %p839_p9 = pnand %p838_p8, %p832_p5 }
  0x32   :  { %842 = shalt.err (!%p839_p9)
}
  0x33   :  { %52 = dma.hbm_to_vmem [thread:$0]  %s1037_s3, 4096, %s47_s22, [#allocation6], %s896_s15, %s896_s15, %s897_s16  }
  0x34   :  { %s900_s21 = smov [#allocation8]   ;;  %s843_s26 = scalar_lea.hbm %s1039_s5, 2048 }
  0x35   :  { %s60_s23 = sshll.u32 %s900_s21, 4  ;;  %p844_p10 = scmp.ne.s32.totalorder %s1039_s5, %s843_s26  ;;  %s61_s23 = int_to_ptr.vmem [resolvable:$true] %s60_s23 }
  0x36   :  { %p847_p11 = scmp.lt.u32.totalorder %s843_s26, %s1039_s5 }
  0x38   :  { %p849_p12 = pnand %p847_p11, %p844_p10 }
  0x3a   :  { %852 = shalt.err (!%p849_p12)
}
  0x3b   :  { %s853_s28 = scalar_lea.vmem %s61_s23, 2048  ;;  %p858_p0 = scmp.lt.s32.totalorder %s61_s23, %s61_s23 }
  0x3c   :  { %p854_p13 = scmp.ne.s32.totalorder %s61_s23, %s853_s28  ;;  %p859_p1 = scmp.lt.s32.totalorder %s853_s28, %s853_s28 }
  0x3e   :  { %p860_p2 = por %p859_p1, %p858_p0 }
  0x40   :  { %p861_p3 = pnand %p860_p2, %p854_p13 }
  0x42   :  { %864 = shalt.err (!%p861_p3)
}
  0x43   :  { %s901_s3 = smov 64   ;;  %s902_s15 = smov 4  }
  0x44   :  { %66 = dma.hbm_to_vmem [thread:$0]  %s1039_s5, 2048, %s61_s23, [#allocation9], %s901_s3, %s901_s3, %s902_s15  }
  0x45   :  { %887 = dma.done.wait [#allocation3], 128  }
  0x46   :  { %888 = vsyncadd [#allocation3], 4294967168 }
  0x47   :  { %889 = dma.done.wait [#allocation6], 4352  }
  0x48   :  { %890 = vsyncadd [#allocation6], 4294962944 }
  0x49   :  { %891 = dma.done.wait [#allocation9], 2048  }
  0x4a   :  { %892 = vsyncadd [#allocation9], 4294965248  ;;  %v903_v0 = vmov 0   ;;  %v708_v1 = vld [vmem:[#allocation5 + $0x4] ss:$8 sps:$4 sm:$0xff]   ;;  %v84_v3 = vld [vmem:[#allocation2] sm:$0xff]  ;;  %v90_v49 = vlaneseq }
  0x4b   :  { %146 = vmatprep.mubr.bf16.mxu0 %v903_v0  ;;  %v710_v2 = vld [vmem:[#allocation5] ss:$8 sps:$4 sm:$0xff]   ;;  %114 = vmatprep.subr.bf16.mxu0 %v708_v1  ;;  %v85_v4 = vpack.c.bf16 %v84_v3, %v84_v3  ;;  %v711_v5 = vld [vmem:[#allocation7 + $0x4] ss:$8 sps:$4 sm:$0xff]   ;;  %v713_v6 = vld [vmem:[#allocation7] ss:$8 sps:$4 sm:$0xff]  }
  0x4c   :  { %115 = vmatpush1.bf16.msra.mxu0 %v710_v2  ;;  %vm110_vm0 = vcmask 130048   ;;  %v714_v7 = vld [vmem:[#allocation7 + $0x14] ss:$8 sps:$4 sm:$0xff]   ;;  %363 = vmatprep.subr.bf16.mxu1 %v711_v5  ;;  %v716_v8 = vld [vmem:[#allocation7 + $0x10] ss:$8 sps:$4 sm:$0xff]   ;;  %v759_v37 = vld [vmem:[#allocation8 + $0x40] sm:$0xff]  }
  0x4d   :  { %364 = vmatpush1.bf16.msra.mxu1 %v713_v6  ;;  %v717_v9 = vld [vmem:[#allocation7 + $0x24] ss:$8 sps:$4 sm:$0xff]   ;;  %v719_v10 = vld [vmem:[#allocation7 + $0x20] ss:$8 sps:$4 sm:$0xff]   ;;  %v720_v11 = vld [vmem:[#allocation7 + $0x34] ss:$8 sps:$4 sm:$0xff]   ;;  %676 = vmatprep.subr.bf16.mxu0 %v759_v37 }
  0x4e   :  { %365 = vmatprep.subr.bf16.mxu1 %v714_v7  ;;  %v722_v12 = vld [vmem:[#allocation7 + $0x30] ss:$8 sps:$4 sm:$0xff]   ;;  %v723_v13 = vld [vmem:[#allocation7 + $0x44] ss:$8 sps:$4 sm:$0xff]   ;;  %v725_v14 = vld [vmem:[#allocation7 + $0x40] ss:$8 sps:$4 sm:$0xff]  }
  0x4f   :  { %623 = vmatmul.mubr.msk.bf16.vlgmr.msra.gmra.mrb[0].mxu0 %vm110_vm0, %v85_v4  ;;  %v726_v15 = vld [vmem:[#allocation7 + $0x54] ss:$8 sps:$4 sm:$0xff]   ;;  %v728_v16 = vld [vmem:[#allocation7 + $0x50] ss:$8 sps:$4 sm:$0xff]   ;;  %v729_v17 = vld [vmem:[#allocation7 + $0x64] ss:$8 sps:$4 sm:$0xff]  }
  0x50   :  { %v731_v18 = vld [vmem:[#allocation7 + $0x60] ss:$8 sps:$4 sm:$0xff]   ;;  %v732_v19 = vld [vmem:[#allocation7 + $0x74] ss:$8 sps:$4 sm:$0xff]   ;;  %v734_v20 = vld [vmem:[#allocation7 + $0x70] ss:$8 sps:$4 sm:$0xff]  }
  0x51   :  { %366 = vmatpush1.bf16.msra.mxu1 %v716_v8  ;;  %v735_v21 = vld [vmem:[#allocation7 + $0x84] ss:$8 sps:$4 sm:$0xff]   ;;  %v737_v22 = vld [vmem:[#allocation7 + $0x80] ss:$8 sps:$4 sm:$0xff]   ;;  %v738_v23 = vld [vmem:[#allocation7 + $0x94] ss:$8 sps:$4 sm:$0xff]  }
  0x52   :  { %367 = vmatprep.subr.bf16.mxu1 %v717_v9  ;;  %v740_v24 = vld [vmem:[#allocation7 + $0x90] ss:$8 sps:$4 sm:$0xff]   ;;  %v741_v25 = vld [vmem:[#allocation7 + $0xa4] ss:$8 sps:$4 sm:$0xff]   ;;  %v743_v26 = vld [vmem:[#allocation7 + $0xa0] ss:$8 sps:$4 sm:$0xff]  }
  0x53   :  { %v744_v27 = vld [vmem:[#allocation7 + $0xb4] ss:$8 sps:$4 sm:$0xff]   ;;  %v746_v28 = vld [vmem:[#allocation7 + $0xb0] ss:$8 sps:$4 sm:$0xff]   ;;  %v747_v29 = vld [vmem:[#allocation7 + $0xc4] ss:$8 sps:$4 sm:$0xff]  }
  0x54   :  { %v749_v30 = vld [vmem:[#allocation7 + $0xc0] ss:$8 sps:$4 sm:$0xff]   ;;  %v750_v31 = vld [vmem:[#allocation7 + $0xd4] ss:$8 sps:$4 sm:$0xff]   ;;  %v752_v32 = vld [vmem:[#allocation7 + $0xd0] ss:$8 sps:$4 sm:$0xff]  }
  0x55   :  { %368 = vmatpush1.bf16.msra.mxu1 %v719_v10  ;;  %v753_v33 = vld [vmem:[#allocation7 + $0xe4] ss:$8 sps:$4 sm:$0xff]   ;;  %v755_v34 = vld [vmem:[#allocation7 + $0xe0] ss:$8 sps:$4 sm:$0xff]   ;;  %v756_v35 = vld [vmem:[#allocation7 + $0xf4] ss:$8 sps:$4 sm:$0xff]  }
  0x56   :  { %369 = vmatprep.subr.bf16.mxu1 %v720_v11  ;;  %v758_v36 = vld [vmem:[#allocation7 + $0xf0] ss:$8 sps:$4 sm:$0xff]   ;;  %v760_v38 = vld [vmem:[#allocation8] sm:$0xff]   ;;  %v761_v39 = vld [vmem:[#allocation8 + $0x48] sm:$0xff]   ;;  %v91_v50 = vshrl.u32 %v90_v49, 7 }
  0x57   :  { %677 = vmatpush3.bf16.msra.mxu0 %v760_v38  ;;  %v762_v40 = vld [vmem:[#allocation8 + $0x8] sm:$0xff]   ;;  %v763_v41 = vld [vmem:[#allocation8 + $0x50] sm:$0xff]   ;;  %v765_v43 = vld [vmem:[#allocation8 + $0x58] sm:$0xff]  }
  0x58   :  { %678 = vmatprep.subr.bf16.mxu0 %v761_v39  ;;  %v764_v42 = vld [vmem:[#allocation8 + $0x10] sm:$0xff]   ;;  %v766_v44 = vld [vmem:[#allocation8 + $0x18] sm:$0xff]   ;;  %v767_v45 = vld [vmem:[#allocation8 + $0x60] sm:$0xff]   ;;  %v92_v51 = vsub.s32 0, %v91_v50  ;;  %v96_v53 = vsub.s32 1, %v91_v50 }
  0x59   :  { %370 = vmatpush1.bf16.msra.mxu1 %v722_v12  ;;  %v768_v46 = vld [vmem:[#allocation8 + $0x20] sm:$0xff]   ;;  %v769_v47 = vld [vmem:[#allocation8 + $0x68] sm:$0xff]   ;;  %v771_v2 = vld [vmem:[#allocation8 + $0x70] sm:$0xff]  }
  0x5a   :  { %371 = vmatprep.subr.bf16.mxu1 %v723_v13  ;;  %v770_v48 = vld [vmem:[#allocation8 + $0x28] sm:$0xff]   ;;  %v772_v3 = vld [vmem:[#allocation8 + $0x30] sm:$0xff]   ;;  %v773_v4 = vld [vmem:[#allocation8 + $0x78] sm:$0xff]  }
  0x5b   :  { %679 = vmatpush3.bf16.msra.mxu0 %v762_v40  ;;  %v88_v52 = vld [vmem:[%s1036_s2] sm:$0x3]  ;;  %v774_v5 = vld [vmem:[#allocation8 + $0x38] sm:$0xff]  }
  0x5c   :  { %680 = vmatprep.subr.bf16.mxu0 %v763_v41  ;;  %v93_v54 = vrot.slane %v88_v52, %v92_v51  ;;  %v97_v55 = vrot.slane %v88_v52, %v96_v53  ;;  %v191_v6 = vld [vmem:[%s1038_s4] sm:$0x3] }
  0x5d   :  { %372 = vmatpush1.bf16.msra.mxu1 %v725_v14  ;;  %v196_v7 = vrot.slane %v191_v6, %v92_v51  ;;  %v200_v8 = vrot.slane %v191_v6, %v96_v53 }
  0x5e   :  { %373 = vmatprep.subr.bf16.mxu1 %v726_v15 }
  0x5f   :  { %681 = vmatpush3.bf16.msra.mxu0 %v764_v42 }
  0x60   :  { %682 = vmatprep.subr.bf16.mxu0 %v765_v43 }
  0x61   :  { %374 = vmatpush1.bf16.msra.mxu1 %v728_v16 }
  0x62   :  { %375 = vmatprep.subr.bf16.mxu1 %v729_v17 }
  0x63   :  { %683 = vmatpush3.bf16.msra.mxu0 %v766_v44 }
  0x64   :  { %684 = vmatprep.subr.bf16.mxu0 %v767_v45 }
  0x65   :  { %376 = vmatpush1.bf16.msra.mxu1 %v731_v18 }
  0x66   :  { %377 = vmatprep.subr.bf16.mxu1 %v732_v19 }
  0x67   :  { %685 = vmatpush3.bf16.msra.mxu0 %v768_v46 }
  0x68   :  { %686 = vmatprep.subr.bf16.mxu0 %v769_v47 }
  0x69   :  { %378 = vmatpush1.bf16.msra.mxu1 %v734_v20  ;;  %v656_v20 = vld [vmem:[%s1040_s6] ss:$0 sm:$0xff]  ;;  %s904_s6 = smov [#allocation10]  }
  0x6a   :  { %379 = vmatprep.subr.bf16.mxu1 %v735_v21  ;;  %s610_s0 = sshll.u32 %s904_s6, 4  ;;  %s611_s0 = int_to_ptr.vmem [resolvable:$true] %s610_s0 }
  0x6b   :  { %687 = vmatpush3.bf16.msra.mxu0 %v770_v48  ;;  %s865_s20 = scalar_lea.vmem %s611_s0, 128  ;;  %p870_p5 = scmp.lt.s32.totalorder %s611_s0, %s611_s0 }
  0x6c   :  { %688 = vmatprep.subr.bf16.mxu0 %v771_v2  ;;  %p866_p4 = scmp.ne.s32.totalorder %s611_s0, %s865_s20  ;;  %p871_p6 = scmp.lt.s32.totalorder %s865_s20, %s865_s20 }
  0x6d   :  { %380 = vmatpush1.bf16.msra.mxu1 %v737_v22 }
  0x6e   :  { %381 = vmatprep.subr.bf16.mxu1 %v738_v23  ;;  %p872_p7 = por %p871_p6, %p870_p5 }
  0x6f   :  { %689 = vmatpush3.bf16.msra.mxu0 %v772_v3 }
  0x70   :  { %690 = vmatprep.subr.bf16.mxu0 %v773_v4  ;;  %p873_p8 = pnand %p872_p7, %p866_p4 }
  0x71   :  { %382 = vmatpush1.bf16.msra.mxu1 %v740_v24 }
  0x72   :  { %383 = vmatprep.subr.bf16.mxu1 %v741_v25 }
  0x73   :  { %691 = vmatpush3.bf16.msra.mxu0 %v774_v5 }
  0x75   :  { %384 = vmatpush1.bf16.msra.mxu1 %v743_v26  ;;  %v673_v26 = vld [vmem:[%s1041_s7] ss:$0 sm:$0xff] }
  0x76   :  { %385 = vmatprep.subr.bf16.mxu1 %v744_v27  ;;  %v674_v27 = vld [vmem:[%s1041_s7 + $0x1] ss:$0 sm:$0xff] }
  0x79   :  { %386 = vmatpush1.bf16.msra.mxu1 %v746_v28 }
  0x7a   :  { %387 = vmatprep.subr.bf16.mxu1 %v747_v29 }
  0x7d   :  { %388 = vmatpush1.bf16.msra.mxu1 %v749_v30 }
  0x7e   :  { %389 = vmatprep.subr.bf16.mxu1 %v750_v31  ;;  %v675_v31 = vld [vmem:[%s1041_s7 + $0x2] ss:$0 sm:$0xff] }
  0x81   :  { %390 = vmatpush1.bf16.msra.mxu1 %v752_v32 }
  0x82   :  { %391 = vmatprep.subr.bf16.mxu1 %v753_v33 }
  0x85   :  { %392 = vmatpush1.bf16.msra.mxu1 %v755_v34 }
  0x86   :  { %393 = vmatprep.subr.bf16.mxu1 %v756_v35 }
  0x89   :  { %394 = vmatpush1.bf16.msra.mxu1 %v758_v36 }
 0x122   :  { %v148_v56 = vpop.f32.mrb[0].mxu0 }
 0x123   :  { %v149_v57 = vadd.f32 %v148_v56, %v93_v54  ;;  %v150_v58 = vpop.f32.mrb[1].mxu0 }
 0x124   :  { %v151_v59 = vadd.f32 %v150_v58, %v97_v55  ;;  %v152_v60 = vpop.f32.mrb[2].mxu0 }
 0x125   :  { %v155_v61 = vmax.f32 %v149_v57, 0.0  ;;  %v153_v62 = vpop.f32.mrb[3].mxu0 }
 0x126   :  { %v156_v63 = vmax.f32 %v151_v59, 0.0 }
 0x127   :  { %v157_v1 = vpack.c.bf16 %v155_v61, %v155_v61 }
 0x128   :  { %v158_v0 = vpack.c.bf16 %v156_v63, %v156_v63 }
 0x12a   :  { %395 = vmatprep.mubr.bf16.mxu1 %v158_v0 }
 0x12b   :  { %396 = vmatmul.mubr.bf16.vlgmr.msra.gmra.mrb[0].mxu1 %v157_v1 }
 0x1fe   :  { %v397_v9 = vpop.f32.mrb[0].mxu1 }
 0x1ff   :  { %v398_v10 = vadd.f32 %v397_v9, %v196_v7  ;;  %v399_v11 = vpop.f32.mrb[1].mxu1 }
 0x200   :  { %v400_v12 = vadd.f32 %v399_v11, %v200_v8  ;;  %v401_v13 = vpop.f32.mrb[2].mxu1 }
 0x201   :  { %v404_v14 = vmax.f32 %v398_v10, 0.0  ;;  %v402_v15 = vpop.f32.mrb[3].mxu1 }
 0x202   :  { %v405_v16 = vmax.f32 %v400_v12, 0.0 }
 0x203   :  { %v406_v18 = vpack.c.bf16 %v404_v14, %v404_v14 }
 0x204   :  { %v407_v17 = vpack.c.bf16 %v405_v16, %v405_v16 }
 0x206   :  { %575 = vmatprep.mubr.bf16.mxu0 %v407_v17 }
 0x207   :  { %576 = vmatmul.mubr.bf16.vlgmr.msra.gmra.mrb[4].mxu0 %v406_v18 }
 0x2da   :  { %v692_v19 = vpop.f32.mrb[4].mxu0 }
 0x2db   :  { %v693_v21 = vpop.f32.mrb[5].mxu0 }
 0x2dc   :  { %v694_v22 = vadd.f32 %v693_v21, %v692_v19  ;;  %v695_v23 = vpop.f32.mrb[6].mxu0 }
 0x2dd   :  { %v696_v24 = vpop.f32.mrb[7].mxu0 }
 0x2de   :  { %v578_v25 = vadd.f32 %v694_v22, %v656_v20 }
 0x2e0   :  { %775 = vtanh.f32 %v578_v25  ;;  %v590_v29 = vmul.f32 %v673_v26, %v578_v25 }
 0x2ea   :  { %v776_v28 = vpop.eup %775 }
 0x2eb   :  { %v596_v30 = vmul.f32 %v776_v28, %v674_v27 }
 0x2ed   :  { %v597_v32 = vadd.f32 %v596_v30, %v590_v29 }
 0x2ef   :  { %v602_v33 = vadd.f32 %v675_v31, %v597_v32 }
 0x2f1   :  { %603 = vst [vmem:[#allocation10] sm:$0xff] %v602_v33 }
 0x2f2   :  { %876 = shalt.err (!%p873_p8)
}
 0x2f3   :  { %s877_s24 = scalar_lea.hbm %s1042_s8, 128 }
 0x2f4   :  { %p878_p9 = scmp.ne.s32.totalorder %s1042_s8, %s877_s24  ;;  %p881_p10 = scmp.lt.u32.totalorder %s877_s24, %s1042_s8 }
 0x2f6   :  { %p883_p11 = pnand %p881_p10, %p878_p9 }
 0x2f8   :  { %886 = shalt.err (!%p883_p11)
}
 0x2f9   :  { %613 = dma.vmem_to_hbm [thread:$0]  %s611_s0, 128, %s1042_s8, [#allocation4]  }
 0x2fa   :  { %893 = dma.done.wait [#allocation4], 128  }
 0x2fb   :  { %894 = vsyncadd [#allocation4], 4294967168 }
 0x2fc   :  { %617 = vsyncpa [#allocation3], 1 }
 0x2fd   :  { %618 = vsyncpa [#allocation6], 1 }
 0x2fe   :  { %619 = vsyncpa [#allocation9], 1 }
 0x2ff   :  { %620 = vsyncpa [#allocation4], 1 }

</bundles_post_ra>
